<compile_context>
chip_gen: v5e
topology: v5e:2x2
jax: 0.10.0
libtpu: 0.0.40
codegen_flags: <defaults>
</compile_context>

<pallas_src>
import functools

import jax
import jax.numpy as jnp
from jax.experimental import pallas as pl
from jax.experimental.pallas import tpu as pltpu


# ----------------------------------------------------------------- Pallas kernel

def _down2x2_gemm_kernel(x_ref, w_ref, b_ref, o_ref):
    """One fused GEMM tile of the 2x2/stride-2 conv.

    x_ref : (tm, 4*Cin)    rows = output pixels, lanes = (di, dj, cin) taps
    w_ref : (4*Cin, CoutP) rows ordered (di, dj, cin); CoutP lane-padded
    b_ref : (1, CoutP)     f32 bias (zero in the padded lanes)
    o_ref : (tm, CoutP)
    """
    acc = jnp.dot(x_ref[...], w_ref[...], preferred_element_type=jnp.float32)
    o_ref[...] = (acc + b_ref[...]).astype(o_ref.dtype)


# ----------------------------------------------------------------- helpers

def _tpu_defaults():
    """(tile_budget_bytes, vmem_limit_bytes) per TPU generation."""
    kind = ""
    try:
        kind = jax.devices()[0].device_kind.lower()
    except Exception:
        pass
    if "v7" in kind or "7x" in kind:          # v7x: 64 MiB physical VMEM
        return 24 << 20, 32 << 20
    return 32 << 20, 48 << 20                 # v5e / v6e: 128 MiB physical VMEM


def _pick_row_tile(m_total, k, cout_p, in_isz, out_isz, fixed_bytes, budget):
    """Largest row tile `tm` (a multiple-of-8 divisor of m_total) whose
    double-buffered blocks fit the budget; prefers >=2 grid blocks so both v7x
    TensorCores get work and the pipeline has something to overlap."""
    if m_total % 8 != 0:
        return m_total                        # full-extent block is always legal

    def fits(tm):
        blk = 2 * tm * (k * in_isz + cout_p * out_isz)   # double-buffered in+out
        return fixed_bytes + blk <= budget

    divisors = [tm for tm in range(8, m_total + 1, 8) if m_total % tm == 0]
    fitting = [tm for tm in divisors if fits(tm)]
    if not fitting:
        return 8
    multi = [tm for tm in fitting if m_total // tm >= 2]
    return max(multi) if multi else max(fitting)


# ----------------------------------------------------------------- wrapper

def down_block_conv(x, w, b, *, data_format="NCHW",
                    compute_dtype=jnp.bfloat16, out_dtype=None):
    """DownBlock(type='conv'): Conv2d(c, 2c, kernel=2, stride=2) + bias.

    x : (N, Cin, H, W) if data_format == "NCHW", else (N, H, W, Cin)
    w : (Cout, Cin, 2, 2)   b : (Cout,)
    Returns (N, Cout, H//2, W//2) (or NHWC) in `out_dtype` (default: x.dtype).
    """
    if data_format == "NCHW":
        n, cin, h, wd = x.shape
    else:
        n, h, wd, cin = x.shape
    cout = w.shape[0]
    assert h % 2 == 0 and wd % 2 == 0, "H and W must be even"
    ho, wo = h // 2, wd // 2
    k = 4 * cin
    m_total = n * ho * wo

    cdt = jnp.dtype(compute_dtype) if compute_dtype is not None else jnp.dtype(x.dtype)
    odt = jnp.dtype(out_dtype) if out_dtype is not None else jnp.dtype(x.dtype)

    # Cast first so the (fusable) packing transpose moves half the bytes.
    xc = x.astype(cdt)
    if data_format == "NCHW":
        # (n, c, ho, di, wo, dj) -> (n, ho, wo, di, dj, c)
        patches = xc.reshape(n, cin, ho, 2, wo, 2).transpose(0, 2, 4, 3, 5, 1)
    else:
        # (n, ho, di, wo, dj, c) -> (n, ho, wo, di, dj, c)
        patches = xc.reshape(n, ho, 2, wo, 2, cin).transpose(0, 1, 3, 2, 4, 5)
    patches = patches.reshape(m_total, k)     # rows = output pixels, lanes = taps

    # (Cout, Cin, 2, 2) -> (di, dj, cin, cout) -> (4*Cin, Cout); lane-pad Cout
    # so small-channel configs still get dense (unmasked) output stores.
    cout_p = 128 if cout < 128 else cout
    wr = jnp.transpose(w, (2, 3, 1, 0)).reshape(k, cout).astype(cdt)
    br = b.astype(jnp.float32).reshape(1, cout)
    if cout_p != cout:
        wr = jnp.pad(wr, ((0, 0), (0, cout_p - cout)))
        br = jnp.pad(br, ((0, 0), (0, cout_p - cout)))

    budget, vmem_limit = _tpu_defaults()
    in_isz, out_isz = cdt.itemsize, odt.itemsize
    fixed_bytes = 2 * (k * cout_p * in_isz + cout_p * 4)     # weight + bias (x2 bufs)
    tm = _pick_row_tile(m_total, k, cout_p, in_isz, out_isz, fixed_bytes, budget)
    nblk = m_total // tm if m_total % tm == 0 else pl.cdiv(m_total, tm)

    cost = pl.CostEstimate(
        flops=2 * m_total * k * cout_p,
        transcendentals=0,
        bytes_accessed=(m_total * k * in_isz + k * cout_p * in_isz
                        + cout_p * 4 + m_total * cout_p * out_isz))

    out = pl.pallas_call(
        _down2x2_gemm_kernel,
        out_shape=jax.ShapeDtypeStruct((m_total, cout_p), odt),
        grid=(nblk,),
        in_specs=[
            pl.BlockSpec((tm, k), lambda i: (i, 0)),
            pl.BlockSpec((k, cout_p), lambda i: (0, 0)),
            pl.BlockSpec((1, cout_p), lambda i: (0, 0)),
        ],
        out_specs=pl.BlockSpec((tm, cout_p), lambda i: (i, 0)),
        compiler_params=pltpu.CompilerParams(
            dimension_semantics=("parallel",),
            vmem_limit_bytes=vmem_limit,
            allow_input_fusion=[True, True, True]),
        cost_estimate=cost,
    )(patches, wr, br)

    out = out[:, :cout].reshape(n, ho, wo, cout)
    if data_format == "NCHW":
        out = jnp.transpose(out, (0, 3, 1, 2))
    return out


def down_block_forward(params, x_nchw, block_type="conv", *,
                       compute_dtype=jnp.bfloat16, out_dtype=None):
    if block_type == "conv":
        return down_block_conv(x_nchw, params["w"], params["b"],
                               data_format="NCHW",
                               compute_dtype=compute_dtype, out_dtype=out_dtype)
    # TODO(synk): the non-default 'maxpool' / 'avgpool' / 'upsample' DownBlock
    # variants (1x1 conv + pool / bilinear 0.5x resize) are not lowered here.
    raise NotImplementedError(block_type)


# ----------------------------------------------------------------- reference

def _reference(x_nchw, w, b):
    y = jax.lax.conv_general_dilated(
        x_nchw, w, window_strides=(2, 2), padding="VALID",
        dimension_numbers=("NCHW", "OIHW", "NCHW"),
        precision=jax.lax.Precision.HIGHEST)
    return y + b[None, :, None, None]


# ----------------------------------------------------------------- main

if __name__ == "__main__":
    key = jax.random.PRNGKey(0)
    kx, kw, kb, kx2, kw2, kb2 = jax.random.split(key, 6)

    # Representative mid-UNet level: c=64, 16x16 spatial, batch 2.
    n, c, h, wdim = 2, 64, 16, 16
    x = jax.random.normal(kx, (n, c, h, wdim), jnp.float32)
    w = jax.random.normal(kw, (2 * c, c, 2, 2), jnp.float32) * (1.0 / (4 * c) ** 0.5)
    b = jax.random.normal(kb, (2 * c,), jnp.float32) * 0.1
    params = {"w": w, "b": b}
    ref = _reference(x, w, b)

    # f32 operand path.  (Tolerance covers the MXU's default-precision bf16
    # demote of f32 operands; both sides would need HIGHEST to assert ~1e-5.)
    fwd_f32 = jax.jit(functools.partial(down_block_forward,
                                        compute_dtype=jnp.float32))
    out_f32 = jax.block_until_ready(fwd_f32(params, x))
    assert out_f32.shape == (n, 2 * c, h // 2, wdim // 2), out_f32.shape
    assert out_f32.dtype == jnp.float32
    assert bool(jnp.allclose(out_f32, ref, atol=5e-2, rtol=5e-2)), \
        float(jnp.max(jnp.abs(out_f32 - ref)))

    # Default path: bf16 operands, f32 MXU accumulation, f32 output.
    fwd = jax.jit(down_block_forward)
    out_bf = jax.block_until_ready(fwd(params, x))
    assert out_bf.shape == out_f32.shape and out_bf.dtype == jnp.float32
    assert bool(jnp.allclose(out_bf, ref, atol=1.5e-1, rtol=1.5e-1))
    assert bool(jnp.all(jnp.isfinite(out_bf)))

    # bf16-output option (halves output HBM traffic).
    fwd_bf16_out = jax.jit(functools.partial(down_block_forward,
                                             out_dtype=jnp.bfloat16))
    out_bf16 = jax.block_until_ready(fwd_bf16_out(params, x))
    assert out_bf16.dtype == jnp.bfloat16
    assert bool(jnp.allclose(out_bf16.astype(jnp.float32), ref,
                             atol=2e-1, rtol=2e-1))

    # Lane-sparse small-channel config (c=4, Cout=8): exercises the Cout->128
    # lane-padding (dense store) path.
    c_s = 4
    x2 = jax.random.normal(kx2, (2, c_s, 16, 16), jnp.float32)
    w2 = jax.random.normal(kw2, (2 * c_s, c_s, 2, 2), jnp.float32) * 0.25
    b2 = jax.random.normal(kb2, (2 * c_s,), jnp.float32) * 0.1
    out2 = jax.block_until_ready(fwd({"w": w2, "b": b2}, x2))
    assert out2.shape == (2, 2 * c_s, 8, 8), out2.shape
    assert bool(jnp.allclose(out2, _reference(x2, w2, b2), atol=1e-1, rtol=1e-1))

    # NHWC end-to-end entry point (no NCHW adapters): must match exactly.
    x_nhwc = jnp.transpose(x, (0, 2, 3, 1))
    out_nhwc = jax.block_until_ready(
        jax.jit(functools.partial(down_block_conv, data_format="NHWC",
                                  compute_dtype=jnp.float32))(x_nhwc, w, b))
    assert out_nhwc.shape == (n, h // 2, wdim // 2, 2 * c)
    assert bool(jnp.allclose(jnp.transpose(out_nhwc, (0, 3, 1, 2)), out_f32,
                             atol=1e-6, rtol=1e-6))

    print("KERNEL_OK")
</pallas_src>

<mosaic_0001>
module attributes {stable_mosaic.version = 11 : i64} {
  func.func @_down2x2_gemm_kernel(%arg0: i32, %arg1: memref<64x256xf32, #tpu.memory_space<vmem>>, %arg2: memref<256x128xf32, #tpu.memory_space<vmem>>, %arg3: memref<1x128xf32, #tpu.memory_space<vmem>>, %arg4: memref<64x128xf32, #tpu.memory_space<vmem>>) attributes {dimension_semantics = [#tpu.dimension_semantics<parallel>], iteration_bounds = array<i64: 2>, scalar_prefetch = 0 : i64, scratch_operands = 0 : i64, tpu.core_type = #tpu.core_type<tc>, window_params = [{transform_indices = @transform_0, window_bounds = array<i64: 64, 256>}, {pipeline_mode = #tpu.pipeline_mode<synchronous>, transform_indices = @transform_1, window_bounds = array<i64: 256, 128>}, {pipeline_mode = #tpu.pipeline_mode<synchronous>, transform_indices = @transform_2, window_bounds = array<i64: 1, 128>}, {transform_indices = @transform_3, window_bounds = array<i64: 64, 128>}]} {
    %c0 = arith.constant 0 : index
    %c0_0 = arith.constant 0 : index
    %0 = vector.load %arg1[%c0, %c0_0] : memref<64x256xf32, #tpu.memory_space<vmem>>, vector<64x256xf32>
    %c0_1 = arith.constant 0 : index
    %c0_2 = arith.constant 0 : index
    %1 = vector.load %arg2[%c0_1, %c0_2] : memref<256x128xf32, #tpu.memory_space<vmem>>, vector<256x128xf32>
    %cst = arith.constant dense<0.000000e+00> : vector<64x128xf32>
    %2 = tpu.matmul %0, %1, %cst {dimension_numbers = #tpu.dot_dimension_numbers<[1], [0], [0], [1], [0, 0, 1, 1], [], []>} : vector<64x256xf32>, vector<256x128xf32>, vector<64x128xf32> -> vector<64x128xf32>
    %c0_3 = arith.constant 0 : index
    %c0_4 = arith.constant 0 : index
    %3 = vector.load %arg3[%c0_3, %c0_4] : memref<1x128xf32, #tpu.memory_space<vmem>>, vector<1x128xf32>
    %4 = vector.broadcast %3 : vector<1x128xf32> to vector<64x128xf32>
    %5 = arith.addf %2, %4 : vector<64x128xf32>
    %c0_5 = arith.constant 0 : index
    %c0_6 = arith.constant 0 : index
    %6 = vector.load %arg4[%c0_5, %c0_6] : memref<64x128xf32, #tpu.memory_space<vmem>>, vector<64x128xf32>
    tpu.vector_store %arg4[%c0_5, %c0_6], %5 {strides = array<i32>} : memref<64x128xf32, #tpu.memory_space<vmem>>, vector<64x128xf32>,
    return
  }
  func.func @transform_0(%arg0: i32) -> (i32, i32) {
    %c0_i32 = arith.constant 0 : i32
    %c0_i32_0 = arith.constant 0 : i32
    return %arg0, %c0_i32 : i32, i32
  }
  func.func @transform_1(%arg0: i32) -> (i32, i32) {
    %c0_i32 = arith.constant 0 : i32
    %c0_i32_0 = arith.constant 0 : i32
    %c0_i32_1 = arith.constant 0 : i32
    return %c0_i32, %c0_i32_0 : i32, i32
  }
  func.func @transform_2(%arg0: i32) -> (i32, i32) {
    %c0_i32 = arith.constant 0 : i32
    %c0_i32_0 = arith.constant 0 : i32
    %c0_i32_1 = arith.constant 0 : i32
    return %c0_i32, %c0_i32_0 : i32, i32
  }
  func.func @transform_3(%arg0: i32) -> (i32, i32) {
    %c0_i32 = arith.constant 0 : i32
    %c0_i32_0 = arith.constant 0 : i32
    return %arg0, %c0_i32 : i32, i32
  }
}

</mosaic_0001>

<bundles_post_ra>
// kernel: down_block_forward.2
= control target key start
LH: loop header
LB: loop body
LE: loop exit
PB: predicated region body
PF: predicated region fallthrough
CT: control target
= control target key end

     0   :  { %8 = vsyncpa [#allocation3], 0  ;;  %s790_s0 = inlined_call_operand.vmem [shape: f32[128,256], index: 0, kind: input, shape index: {}]   ;;  %s791_s1 = inlined_call_operand.vmem [shape: f32[256,128], index: 1, kind: input, shape index: {}]   ;;  %s792_s2 = inlined_call_operand.vmem [shape: f32[128], index: 2, kind: input, shape index: {}]   ;;  %s793_s3 = inlined_call_operand.hbm [shape: f32[128,128], index: 3, kind: output, shape index: {}]  }
   0x1   :  { %10 = vsyncpa [#allocation3 + $0x1], 0  ;;  %s574_s12 = smov 0   ;;  %s576_s13 = smov 0  }
   0x2   :  { %s578_s14 = smov 0   ;;  %s580_s15 = smov 0  }
   0x3 LB: > { %s595_s16 = sadd.s32 4294967295, %s550_s15   ;;  %s399_s17 = sadd.s32 4294967294, %s550_s15   ;;  %s550_s15 = sphi %s580_s15, %s799_s15   ;;  %s546_s14 = sphi %s578_s14, %s798_s14   ;;  %s542_s13 = sphi %s576_s13, %s797_s13   ;;  %s538_s12 = sphi %s574_s12, %s796_s12  }
   0x4   : > { %s599_s18 = sadd.s32 1, %s550_s15   ;;  %s91_s19 = sadd.s32 1, %s546_s14 }
   0x5   : > { %s88_s20 = ssub.s32 %s550_s15, %s599_s18  ;;  %p101_p0 = scmp.ne.s32.totalorder %s546_s14, %s542_s13 }
   0x6   : > { %p89_p1 = scmp.eq.s32.totalorder %s88_s20, 0  ;;  %p102_p2 = scmp.eq.s32.totalorder %s595_s16, 1 }
   0x7   : > { %p107_p3 = scmp.ne.s32.totalorder %s542_s13, %s538_s12  ;;  %p108_p4 = scmp.eq.s32.totalorder %s399_s17, 1 }
   0x8   : > { %s610_s21 = scalar_select %p89_p1, %s546_s14, %s91_s19  }
   0x9   : > { %p612_p5 = por %p102_p2, %p101_p0  ;;  %p616_p6 = por %p108_p4, %p107_p3 }
   0xa   : > { %p402_p7 = scmp.ge.s32.totalorder %s550_s15, 1  ;;  %p142_p8 = scmp.lt.s32.totalorder %s550_s15, 3 }
   0xc   : > { %p143_p9 = pnand %p402_p7, %p142_p8 }
   0xe   : > { %146 = sbr.rel (%p143_p9) target bundleno = 215 (0xd7), region = 32 }
  0x13   : > { %v210_v0 = vld [vmem:[%s791_s1 + $0x78] sm:$0xff]  ;;  %v209_v1 = vld [vmem:[%s791_s1 + $0x70] sm:$0xff]  ;;  %v208_v4 = vld [vmem:[%s791_s1 + $0x68] sm:$0xff]  ;;  %s404_s11 = sshll.u32 %s595_s16, 3  ;;  %s413_s27 = sshll.u32 %s595_s16, 6 }
  0x14   : > { %v226_v2 = vld [vmem:[%s791_s1 + $0xf8] sm:$0xff]  ;;  %414 = vmatpush.msra.mxu2 %v210_v0  ;;  %v225_v3 = vld [vmem:[%s791_s1 + $0xf0] sm:$0xff]  ;;  %231 = vmatpush.msra.mxu0 %v210_v0  ;;  %v224_v5 = vld [vmem:[%s791_s1 + $0xe8] sm:$0xff]  ;;  %p168_p10 = scmp.lt.s32.totalorder %s404_s11, 15  ;;  %s333_s30 = scalar_lea.hbm %s793_s3, %s413_s27 }
  0x15   : > { %430 = vmatpush.msra.mxu3 %v226_v2  ;;  %272 = vmatpush.msra.mxu1 %v226_v2  ;;  %v207_v6 = vld [vmem:[%s791_s1 + $0x60] sm:$0xff]  ;;  %v206_v8 = vld [vmem:[%s791_s1 + $0x58] sm:$0xff]  ;;  %v205_v10 = vld [vmem:[%s791_s1 + $0x50] sm:$0xff]  ;;  %s336_s5 = sshll.u32 %s333_s30, 4  ;;  %s508_s9 = scalar_lea.hbm %s793_s3, 128  ;;  %s337_s5 = int_to_ptr.hbm [resolvable:$true] %s336_s5 }
  0x16   : > { %415 = vmatpush.msra.mxu2 %v209_v1  ;;  %232 = vmatpush.msra.mxu0 %v209_v1  ;;  %v223_v7 = vld [vmem:[%s791_s1 + $0xe0] sm:$0xff]  ;;  %v222_v9 = vld [vmem:[%s791_s1 + $0xd8] sm:$0xff]  ;;  %v221_v11 = vld [vmem:[%s791_s1 + $0xd0] sm:$0xff]  ;;  %s801_s11 = smov (!%p168_p10, %s404_s11), 15 }
  0x17   : > { %431 = vmatpush.msra.mxu3 %v225_v3  ;;  %273 = vmatpush.msra.mxu1 %v225_v3  ;;  %v204_v12 = vld [vmem:[%s791_s1 + $0x48] sm:$0xff]  ;;  %v203_v14 = vld [vmem:[%s791_s1 + $0x40] sm:$0xff]  ;;  %v202_v16 = vld [vmem:[%s791_s1 + $0x38] sm:$0xff]  ;;  %s412_s24 = sshll.u32 %s801_s11, 4  ;;  %s502_s11 = sshra.s32 %s337_s5, 4  ;;  %s503_s11 = int_to_ptr.hbm [resolvable:$true] %s502_s11 }
  0x18   : > { %416 = vmatpush.msra.mxu2 %v208_v4  ;;  %233 = vmatpush.msra.mxu0 %v208_v4  ;;  %v220_v13 = vld [vmem:[%s791_s1 + $0xc8] sm:$0xff]  ;;  %v219_v15 = vld [vmem:[%s791_s1 + $0xc0] sm:$0xff]  ;;  %v218_v17 = vld [vmem:[%s791_s1 + $0xb8] sm:$0xff]  ;;  %s716_s7 = scalar_lea.vmem %s790_s0, %s412_s24  ;;  %s164_s24 = sand.u32 1, %s542_s13  }
  0x19   : > { %432 = vmatpush.msra.mxu3 %v224_v5  ;;  %274 = vmatpush.msra.mxu1 %v224_v5  ;;  %v201_v18 = vld [vmem:[%s791_s1 + $0x30] sm:$0xff]  ;;  %v200_v20 = vld [vmem:[%s791_s1 + $0x28] sm:$0xff]  ;;  %v199_v22 = vld [vmem:[%s791_s1 + $0x20] sm:$0xff]  ;;  %s403_s25 = sshll.u32 %s164_s24, 6  ;;  %s322_s16 = scalar_lea.sflag [#allocation3], %s164_s24 }
  0x1a   : > { %417 = vmatpush.msra.mxu2 %v207_v6  ;;  %234 = vmatpush.msra.mxu0 %v207_v6  ;;  %v217_v19 = vld [vmem:[%s791_s1 + $0xb0] sm:$0xff]  ;;  %v216_v21 = vld [vmem:[%s791_s1 + $0xa8] sm:$0xff]  ;;  %v215_v23 = vld [vmem:[%s791_s1 + $0xa0] sm:$0xff]  ;;  %s746_s26 = scalar_lea.vmem [#allocation2], %s403_s25  ;;  %s504_s6 = scalar_lea.hbm %s503_s11, 64 }
  0x1b   : > { %433 = vmatpush.msra.mxu3 %v223_v7  ;;  %275 = vmatpush.msra.mxu1 %v223_v7  ;;  %v198_v24 = vld [vmem:[%s791_s1 + $0x18] sm:$0xff]  ;;  %v197_v26 = vld [vmem:[%s791_s1 + $0x10] sm:$0xff]  ;;  %v196_v28 = vld [vmem:[%s791_s1 + $0x8] sm:$0xff]  ;;  %s334_s4 = sshll.u32 %s746_s26, 4  ;;  %p505_p11 = scmp.ne.s32.totalorder %s503_s11, %s504_s6  ;;  %s335_s4 = int_to_ptr.vmem [resolvable:$true] %s334_s4 }
  0x1c   : > { %418 = vmatpush.msra.mxu2 %v206_v8  ;;  %235 = vmatpush.msra.mxu0 %v206_v8  ;;  %v214_v25 = vld [vmem:[%s791_s1 + $0x98] sm:$0xff]  ;;  %v213_v27 = vld [vmem:[%s791_s1 + $0x90] sm:$0xff]  ;;  %v212_v29 = vld [vmem:[%s791_s1 + $0x88] sm:$0xff]  ;;  %p509_p0 = scmp.lt.s32.totalorder %s503_s11, %s793_s3  ;;  %p510_p1 = scmp.lt.s32.totalorder %s508_s9, %s504_s6 }
  0x1d   : > { %434 = vmatpush.msra.mxu3 %v222_v9  ;;  %276 = vmatpush.msra.mxu1 %v222_v9  ;;  %v175_v30 = vld [vmem:[%s792_s2] sm:$0x1]  ;;  %v188_v34 = vld [vmem:[%s716_s7 + $0x48] sm:$0xff]  ;;  %v189_v37 = vld [vmem:[%s716_s7 + $0x50] sm:$0xff]  ;;  %p506_p12 = pnand %p505_p11, %p612_p5 }
  0x1e   : > { %419 = vmatpush.msra.mxu2 %v205_v10  ;;  %236 = vmatpush.msra.mxu0 %v205_v10  ;;  %178 = vst [vmem:[#allocation4] sm:$0x1] %v175_v30  ;;  %v195_v31 = vld [vmem:[%s791_s1] sm:$0xff]  ;;  %v180_v36 = vld [vmem:[%s716_s7 + $0x8] sm:$0xff]  ;;  %v190_v38 = vld [vmem:[%s716_s7 + $0x58] sm:$0xff]  ;;  %p511_p2 = por %p510_p1, %p509_p0 }
  0x1f   : > { %435 = vmatpush.msra.mxu3 %v221_v11  ;;  %277 = vmatpush.msra.mxu1 %v221_v11  ;;  %v211_v32 = vld [vmem:[%s791_s1 + $0x80] sm:$0xff]  ;;  %v181_v39 = vld [vmem:[%s716_s7 + $0x10] sm:$0xff]  ;;  %v182_v40 = vld [vmem:[%s716_s7 + $0x18] sm:$0xff]  ;;  %p507_p13 = pneg %p506_p12 }
  0x20   : > { %420 = vmatpush.msra.mxu2 %v204_v12  ;;  %237 = vmatpush.msra.mxu0 %v204_v12  ;;  %v187_v33 = vld [vmem:[%s716_s7 + $0x40] sm:$0xff]  ;;  %v192_v42 = vld [vmem:[%s716_s7 + $0x68] sm:$0xff]  ;;  %v193_v45 = vld [vmem:[%s716_s7 + $0x70] sm:$0xff] }
  0x21   : > { %436 = vmatpush.msra.mxu3 %v220_v13  ;;  %278 = vmatpush.msra.mxu1 %v220_v13  ;;  %v179_v35 = vld [vmem:[%s716_s7] sm:$0xff]  ;;  %v184_v44 = vld [vmem:[%s716_s7 + $0x28] sm:$0xff]  ;;  %v194_v46 = vld [vmem:[%s716_s7 + $0x78] sm:$0xff]  ;;  %p512_p3 = pnand %p511_p2, %p507_p13 }
  0x22   : > { %421 = vmatpush.msra.mxu2 %v203_v14  ;;  %238 = vmatpush.msra.mxu0 %v203_v14  ;;  %v191_v41 = vld [vmem:[%s716_s7 + $0x60] sm:$0xff]  ;;  %v185_v47 = vld [vmem:[%s716_s7 + $0x30] sm:$0xff]  ;;  %v186_v48 = vld [vmem:[%s716_s7 + $0x38] sm:$0xff] }
  0x23   : > { %437 = vmatpush.msra.mxu3 %v219_v15  ;;  %279 = vmatpush.msra.mxu1 %v219_v15  ;;  %v183_v43 = vld [vmem:[%s716_s7 + $0x20] sm:$0xff] }
  0x24   : > { %422 = vmatpush.msra.mxu2 %v202_v16  ;;  %239 = vmatpush.msra.mxu0 %v202_v16 }
  0x25   : > { %438 = vmatpush.msra.mxu3 %v218_v17  ;;  %280 = vmatpush.msra.mxu1 %v218_v17  ;;  %v487_v49 = vld [vmem:[#allocation4] ss:$0 sm:$0xff] }
  0x26   : > { %423 = vmatpush.msra.mxu2 %v201_v18  ;;  %240 = vmatpush.msra.mxu0 %v201_v18 }
  0x27   : > { %439 = vmatpush.msra.mxu3 %v217_v19  ;;  %281 = vmatpush.msra.mxu1 %v217_v19 }
  0x28   : > { %424 = vmatpush.msra.mxu2 %v200_v20  ;;  %241 = vmatpush.msra.mxu0 %v200_v20 }
  0x29   : > { %440 = vmatpush.msra.mxu3 %v216_v21  ;;  %282 = vmatpush.msra.mxu1 %v216_v21 }
  0x2a   : > { %425 = vmatpush.msra.mxu2 %v199_v22  ;;  %242 = vmatpush.msra.mxu0 %v199_v22 }
  0x2b   : > { %441 = vmatpush.msra.mxu3 %v215_v23  ;;  %283 = vmatpush.msra.mxu1 %v215_v23 }
  0x2c   : > { %426 = vmatpush.msra.mxu2 %v198_v24  ;;  %243 = vmatpush.msra.mxu0 %v198_v24 }
  0x2d   : > { %442 = vmatpush.msra.mxu3 %v214_v25  ;;  %284 = vmatpush.msra.mxu1 %v214_v25 }
  0x2e   : > { %427 = vmatpush.msra.mxu2 %v197_v26  ;;  %244 = vmatpush.msra.mxu0 %v197_v26 }
  0x2f   : > { %443 = vmatpush.msra.mxu3 %v213_v27  ;;  %285 = vmatpush.msra.mxu1 %v213_v27 }
  0x30   : > { %428 = vmatpush.msra.mxu2 %v196_v28  ;;  %245 = vmatpush.msra.mxu0 %v196_v28 }
  0x31   : > { %444 = vmatpush.msra.mxu3 %v212_v29  ;;  %286 = vmatpush.msra.mxu1 %v212_v29 }
  0x32   : > { %429 = vmatpush.msra.mxu2 %v195_v31  ;;  %246 = vmatpush.msra.mxu0 %v195_v31 }
  0x33   : > { %445 = vmatpush.msra.mxu3 %v211_v32  ;;  %259 = vmatmul.f32.vlgmr.msra.gmra.mxu2 %v187_v33 }
  0x34   : > { %300 = vmatmul.f32.vlgmr.msra.gmra.mxu3 %v188_v34  ;;  %287 = vmatpush.msra.mxu1 %v211_v32 }
  0x35   : > { %247 = vmatmul.f32.vlgmr.msra.gmra.mxu0 %v179_v35  ;;  %288 = vmatmul.f32.vlgmr.msra.gmra.mxu1 %v180_v36 }
  0x3b   : > { %262 = vmatmul.f32.gmra.mxu2 %v189_v37 }
  0x3c   : > { %303 = vmatmul.f32.gmra.mxu3 %v190_v38 }
  0x3d   : > { %250 = vmatmul.f32.gmra.mxu0 %v181_v39  ;;  %291 = vmatmul.f32.gmra.mxu1 %v182_v40 }
  0x43   : > { %265 = vmatmul.f32.gmra.mxu2 %v191_v41 }
  0x44   : > { %306 = vmatmul.f32.gmra.mxu3 %v192_v42 }
  0x45   : > { %253 = vmatmul.f32.gmra.mxu0 %v183_v43  ;;  %294 = vmatmul.f32.gmra.mxu1 %v184_v44 }
  0x4b   : > { %268 = vmatmul.f32.gmra.mxu2 %v193_v45 }
  0x4c   : > { %309 = vmatmul.f32.gmra.mxu3 %v194_v46 }
  0x4d   : > { %256 = vmatmul.f32.gmra.mxu0 %v185_v47  ;;  %297 = vmatmul.f32.gmra.mxu1 %v186_v48 }
  0xb2   : > { %v248_v50 = vpop.f32.mrf.mxu0  ;;  %v289_v51 = vpop.f32.mrf.mxu1 }
  0xb3   : > { %v249_v52 = vadd.f32 %v487_v49, %v248_v50 }
  0xb5   : > { %v290_v53 = vadd.f32 %v289_v51, %v249_v52 }
  0xb6   : > { %v260_v54 = vpop.f32.mrf.mxu2 }
  0xb7   : > { %v301_v55 = vpop.f32.mrf.mxu3  ;;  %v261_v56 = vadd.f32 %v487_v49, %v260_v54  ;;  %313 = vst [vmem:[%s746_s26] sm:$0xff] %v290_v53 }
  0xb9   : > { %v302_v57 = vadd.f32 %v301_v55, %v261_v56 }
  0xba   : > { %v251_v58 = vpop.f32.mrf.mxu0  ;;  %v292_v59 = vpop.f32.mrf.mxu1 }
  0xbb   : > { %317 = vst [vmem:[%s746_s26 + $0x20] sm:$0xff] %v302_v57  ;;  %v252_v60 = vadd.f32 %v487_v49, %v251_v58 }
  0xbd   : > { %v293_v61 = vadd.f32 %v292_v59, %v252_v60 }
  0xbe   : > { %v263_v62 = vpop.f32.mrf.mxu2 }
  0xbf   : > { %v304_v63 = vpop.f32.mrf.mxu3  ;;  %v264_v0 = vadd.f32 %v487_v49, %v263_v62  ;;  %314 = vst [vmem:[%s746_s26 + $0x8] sm:$0xff] %v293_v61 }
  0xc1   : > { %v305_v1 = vadd.f32 %v304_v63, %v264_v0 }
  0xc2   : > { %v254_v2 = vpop.f32.mrf.mxu0  ;;  %v295_v3 = vpop.f32.mrf.mxu1 }
  0xc3   : > { %318 = vst [vmem:[%s746_s26 + $0x28] sm:$0xff] %v305_v1  ;;  %v255_v4 = vadd.f32 %v487_v49, %v254_v2 }
  0xc5   : > { %v296_v5 = vadd.f32 %v295_v3, %v255_v4 }
  0xc6   : > { %v266_v6 = vpop.f32.mrf.mxu2 }
  0xc7   : > { %v307_v7 = vpop.f32.mrf.mxu3  ;;  %v267_v8 = vadd.f32 %v487_v49, %v266_v6  ;;  %315 = vst [vmem:[%s746_s26 + $0x10] sm:$0xff] %v296_v5 }
  0xc9   : > { %v308_v9 = vadd.f32 %v307_v7, %v267_v8 }
  0xca   : > { %v257_v10 = vpop.f32.mrf.mxu0  ;;  %v298_v11 = vpop.f32.mrf.mxu1 }
  0xcb   : > { %319 = vst [vmem:[%s746_s26 + $0x30] sm:$0xff] %v308_v9  ;;  %v258_v12 = vadd.f32 %v487_v49, %v257_v10 }
  0xcd   : > { %v299_v13 = vadd.f32 %v298_v11, %v258_v12 }
  0xce   : > { %v269_v14 = vpop.f32.mrf.mxu2 }
  0xcf   : > { %v310_v15 = vpop.f32.mrf.mxu3  ;;  %v270_v16 = vadd.f32 %v487_v49, %v269_v14  ;;  %316 = vst [vmem:[%s746_s26 + $0x18] sm:$0xff] %v299_v13 }
  0xd1   : > { %v311_v17 = vadd.f32 %v310_v15, %v270_v16 }
  0xd3   : > { %320 = vst [vmem:[%s746_s26 + $0x38] sm:$0xff] %v311_v17 }
  0xd4   : > { %515 = shalt.err (!%p512_p3)
}
  0xd5   : > { %s552_s19 = smov 128   ;;  %s553_s20 = smov 8  }
  0xd6   : > { %446 = dma.vmem_to_hbm [thread:$0]  (%p612_p5), %s335_s4, 1024, %s337_s5, %s322_s16, %s552_s19, %s552_s19, %s553_s20  }
  0xd7 PF: > { %p452_p4 = scmp.ge.s32.totalorder %s550_s15, 2  ;;  %s351_s24 = sand.u32 1, %s538_s12  }
  0xd8   : > { %s352_s25 = scalar_lea.sflag [#allocation3], %s351_s24 }
  0xd9   : > { %p449_p7 = pnand %p452_p4, %p616_p6 }
  0xdb   : > { %p450_p8 = pneg %p449_p7 }
  0xdd   : > { %533 = dma.done.wait (%p450_p8), %s352_s25, 1024  }
  0xde   : > { %535 = vsyncadd (%p450_p8), %s352_s25, 4294966272  ;;  %p13_p9 = scmp.ge.s32.totalorder %s599_s18, 4   ;;  %s796_s12 = smov %s542_s13 }
  0xdf   : > { %s797_s13 = smov %s546_s14  ;;  %s798_s14 = smov %s610_s21 }
  0xe0   : > { %s799_s15 = smov %s599_s18  ;;  %15 = sbr.rel (!%p13_p9) target bundleno = 3 (0x3), region = 67 }
  0xe5   :  { %358 = vsyncpa [#allocation3], 1 }
  0xe6   :  { %360 = vsyncpa [#allocation3 + $0x1], 1 }

</bundles_post_ra>
